<compile_context>
chip_gen: v7x
topology: tpu7x:2x2x1
jax: 0.10.0
libtpu: 0.0.40
codegen_flags: <defaults>
</compile_context>

<pallas_src>
import numpy as np
import jax
import jax.numpy as jnp
from jax import lax
from jax.experimental import pallas as pl
from jax.experimental.pallas import tpu as pltpu

HIGHEST = lax.Precision.HIGHEST            # used only by the pure-JAX reference
_INV_SQRT2 = float(1.0 / np.sqrt(2.0))


def _const_map(ndim):
    return lambda n: (0,) * ndim


# ----------------------------------------------------------------------------
# Fused kernel: all TCN blocks + BN/linear head + haar branch, one pallas_call
# ----------------------------------------------------------------------------
def _make_fused_tcn_kernel(cfgs, L, pad):
    """cfgs: static per-block dicts {K, dil, has_down}; L: sequence length;
    pad: max causal left padding over all blocks (= (K-1)*max_dilation)."""

    def kernel(*refs):
        x_ref = refs[0]          # (1, C0, L)
        o_ref = refs[-3]         # (1, n_out, L)  linear head over all t
        h_ref = refs[-2]         # (1, 2*C0, 1)   haar branch (last coeff only)
        stage = refs[-1]         # (C_max, pad+L) persistent VMEM staging

        # Zero the causal-pad columns once per invocation (signal region
        # [pad, pad+L) is fully overwritten before every read).  Not guarded by
        # program_id so every megacore instance keeps a valid pad region.
        stage[:, 0:pad] = jnp.zeros((stage.shape[0], pad), jnp.float32)

        def causal_conv(y, K, dil, w_ref, b_ref):
            """Causal dilated conv as ONE MXU matmul.

            y: (C, L) value.  w_ref: (C_out, K*C) host-flattened taps.
            The K dilation-shifted (left-zero-padded) views of y are gathered
            as windowed reads of the staging buffer and stacked on the sublane
            axis -> (K*C, L) im2col slab.
            """
            C = y.shape[0]
            stage[0:C, pad:pad + L] = y
            taps = []
            for k in range(K):
                s = (K - 1 - k) * dil            # causal right-shift of tap k
                taps.append(y if s == 0
                            else stage[0:C, pad - s:pad - s + L])
            slab = jnp.concatenate(taps, axis=0)             # (K*C, L)
            return jnp.dot(w_ref[...], slab,
                           preferred_element_type=jnp.float32) + b_ref[...]

        idx = 1
        y = x_ref[0]                                         # (C0, L)
        for cfg in cfgs:
            K, dil = cfg["K"], cfg["dil"]
            w1, b1, w2, b2 = refs[idx:idx + 4]
            idx += 4
            if cfg["has_down"]:
                wd, bd = refs[idx:idx + 2]
                idx += 2
            h = jnp.maximum(causal_conv(y, K, dil, w1, b1), 0.0)
            out = jnp.maximum(causal_conv(h, K, dil, w2, b2), 0.0)
            if cfg["has_down"]:                              # 1x1 conv residual
                res = jnp.dot(wd[...], y,
                              preferred_element_type=jnp.float32) + bd[...]
            else:
                res = y
            y = jnp.maximum(out + res, 0.0)                  # TCN_block output

        bns, bnb, wlt, bl, hbns, hbnb = refs[idx:idx + 6]

        # Head: folded eval-mode BatchNorm + Linear, computed over the whole
        # (cheap, lane-dense) time axis; wrapper slices out t = L-1.
        y_norm = y * bns[...] + bnb[...]                     # (C_last, L)
        o_ref[0] = jnp.dot(wlt[...], y_norm,
                           preferred_element_type=jnp.float32) + bl[...]

        # Haar branch: only the LAST 'haar' DWT coefficient of each row is
        # needed:  [x[:, -1] ; (x[:, -2] - x[:, -1]) / sqrt(2)], then folded BN.
        x_last = x_ref[0, :, L - 1:L]                        # (C0, 1)
        x_prev = x_ref[0, :, L - 2:L - 1]                    # (C0, 1)
        haar = jnp.concatenate([x_last, (x_prev - x_last) * _INV_SQRT2],
                               axis=0)                       # (2*C0, 1)
        h_ref[0] = haar * hbns[...] + hbnb[...]

    return kernel


# ----------------------------------------------------------------------------
# One-time host-side parameter prep: flatten conv taps, fold BN, transpose W.
# ----------------------------------------------------------------------------
def prepare_params(params, input_channels):
    eps = 1e-5
    cfgs, flat = [], []
    c_in = input_channels
    pad, c_max = 0, input_channels
    for blk in params["blocks"]:
        K, dil = int(blk["K"]), int(blk["dil"])
        c_out = blk["w1"].shape[1]
        has_down = "wd" in blk
        cfgs.append(dict(K=K, dil=dil, has_down=has_down))
        pad = max(pad, (K - 1) * dil)
        c_max = max(c_max, c_out)
        # (K, C_out, C_in) -> (C_out, K*C_in) so each conv is one matmul.
        w1f = jnp.transpose(blk["w1"], (1, 0, 2)).reshape(c_out, K * c_in)
        w2f = jnp.transpose(blk["w2"], (1, 0, 2)).reshape(c_out, K * c_out)
        flat += [w1f, blk["b1"], w2f, blk["b2"]]
        if has_down:
            flat += [blk["wd"], blk["bd"]]
        c_in = c_out
    bn, hbn, lin = params["input_bn"], params["haar_bn"], params["linear"]
    n_out = int(lin["w"].shape[1])
    bns = (bn["gamma"] / jnp.sqrt(bn["var"] + eps)).reshape(-1, 1)
    bnb = (bn["beta"] - bn["mean"] * bn["gamma"]
           / jnp.sqrt(bn["var"] + eps)).reshape(-1, 1)
    hbns = (hbn["gamma"] / jnp.sqrt(hbn["var"] + eps)).reshape(-1, 1)
    hbnb = (hbn["beta"] - hbn["mean"] * hbn["gamma"]
            / jnp.sqrt(hbn["var"] + eps)).reshape(-1, 1)
    flat += [bns, bnb, lin["w"].T, lin["b"].reshape(n_out, 1), hbns, hbnb]
    return {"cfgs": cfgs, "flat": flat, "n_out": n_out,
            "pad": pad, "c_max": c_max}


# ----------------------------------------------------------------------------
# Wrapper: one fused pallas_call for the whole forward pass
# ----------------------------------------------------------------------------
def tcn_forward(x, prepared):
    N, C0, L = x.shape
    cfgs, flat = prepared["cfgs"], prepared["flat"]
    n_out, pad, c_max = prepared["n_out"], prepared["pad"], prepared["c_max"]

    in_specs = [pl.BlockSpec((1, C0, L), lambda n: (n, 0, 0))]
    in_specs += [pl.BlockSpec(p.shape, _const_map(p.ndim)) for p in flat]

    kernel = _make_fused_tcn_kernel(cfgs, L, pad)
    out_full, haar_col = pl.pallas_call(
        kernel,
        out_shape=(jax.ShapeDtypeStruct((N, n_out, L), jnp.float32),
                   jax.ShapeDtypeStruct((N, 2 * C0, 1), jnp.float32)),
        grid_spec=pltpu.PrefetchScalarGridSpec(
            num_scalar_prefetch=0,
            grid=(N,),
            in_specs=in_specs,
            out_specs=[pl.BlockSpec((1, n_out, L), lambda n: (n, 0, 0)),
                       pl.BlockSpec((1, 2 * C0, 1), lambda n: (n, 0, 0))],
            scratch_shapes=[pltpu.VMEM((c_max, pad + L), jnp.float32)],
        ),
        compiler_params=pltpu.CompilerParams(
            dimension_semantics=("parallel",)),
    )(x, *flat)
    return out_full[:, :, -1], haar_col[:, :, 0]


# ----------------------------------------------------------------------------
# Deterministic synthetic parameters
# ----------------------------------------------------------------------------
def init_params(key, input_channels, n_channels, K, n_outputs):
    blocks = []
    c_in = input_channels
    for i, c_out in enumerate(n_channels):
        dil = 2 ** i
        key, k1, k2, k3, k4, k5, k6 = jax.random.split(key, 7)
        blk = {
            "K": K, "dil": dil,
            "w1": 0.1 * jax.random.normal(k1, (K, c_out, c_in), jnp.float32),
            "b1": 0.1 * jax.random.normal(k2, (c_out, 1), jnp.float32),
            "w2": 0.1 * jax.random.normal(k3, (K, c_out, c_out), jnp.float32),
            "b2": 0.1 * jax.random.normal(k4, (c_out, 1), jnp.float32),
        }
        if c_in != c_out:  # downsample 1x1 conv
            blk["wd"] = 0.1 * jax.random.normal(k5, (c_out, c_in), jnp.float32)
            blk["bd"] = 0.1 * jax.random.normal(k6, (c_out, 1), jnp.float32)
        blocks.append(blk)
        c_in = c_out
    c_last = n_channels[-1]
    key, k1, k2 = jax.random.split(key, 3)
    ones = lambda n: jnp.ones((n,), jnp.float32)
    zeros = lambda n: jnp.zeros((n,), jnp.float32)
    return {
        "blocks": blocks,
        "input_bn": {"gamma": ones(c_last), "beta": zeros(c_last),
                     "mean": zeros(c_last), "var": ones(c_last)},
        "haar_bn": {"gamma": ones(2 * c_last), "beta": zeros(2 * c_last),
                    "mean": zeros(2 * c_last), "var": ones(2 * c_last)},
        "linear": {"w": 0.1 * jax.random.normal(k1, (c_last, n_outputs),
                                                jnp.float32),
                   "b": 0.1 * jax.random.normal(k2, (n_outputs,),
                                                jnp.float32)},
    }


# ----------------------------------------------------------------------------
# Pure-JAX f32 reference (correctness check only; full HIGHEST precision)
# ----------------------------------------------------------------------------
def haar_features(x):
    # TODO(synk): pywt.dwt('haar') reimplemented directly in JAX (even L).
    cA = (x[:, :, 0::2] + x[:, :, 1::2]) / jnp.sqrt(2.0)
    cD = (x[:, :, 0::2] - x[:, :, 1::2]) / jnp.sqrt(2.0)
    haar_rows = jnp.concatenate([cA, cD], axis=2)      # [cA | cD] per row
    return jnp.concatenate([x, haar_rows], axis=1)     # (N, 2C, L)


def _ref_block(x, blk):
    K, dil = blk["K"], blk["dil"]
    P = (K - 1) * dil
    L = x.shape[2]

    def cconv(z, w, b):
        zp = jnp.pad(z, ((0, 0), (0, 0), (P, 0)))
        out = b[None, :, :]
        for k in range(K):
            out = out + jnp.einsum("oi,nil->nol", w[k],
                                   zp[:, :, k * dil:k * dil + L],
                                   precision=HIGHEST)
        return out

    h = jax.nn.relu(cconv(x, blk["w1"], blk["b1"]))
    out = jax.nn.relu(cconv(h, blk["w2"], blk["b2"]))
    if "wd" in blk:
        res = jnp.einsum("oi,nil->nol", blk["wd"], x,
                         precision=HIGHEST) + blk["bd"][None]
    else:
        res = x
    return jax.nn.relu(out + res)


def ref_forward(x, params):
    y = x
    for blk in params["blocks"]:
        y = _ref_block(y, blk)
    eps = 1e-5
    bn = params["input_bn"]
    y_norm = ((y[:, :, -1] - bn["mean"]) / jnp.sqrt(bn["var"] + eps)
              * bn["gamma"] + bn["beta"])
    output = jnp.dot(y_norm, params["linear"]["w"],
                     precision=HIGHEST) + params["linear"]["b"]
    hbn = params["haar_bn"]
    hz = haar_features(x)[:, :, -1]
    haar_out = ((hz - hbn["mean"]) / jnp.sqrt(hbn["var"] + eps)
                * hbn["gamma"] + hbn["beta"])
    return output, haar_out


# ----------------------------------------------------------------------------
if __name__ == "__main__":
    input_channels = 8
    n_channels = [16, 8, 8]      # last level == input_channels so haar_bn fits
    kernel_size = 3
    stride = 1                   # causal/chomp math requires stride 1
    dropout = 0.2                # eval mode -> identity
    n_outputs = 5
    N, L = 2, 16

    key = jax.random.PRNGKey(0)
    kx, kp = jax.random.split(key)
    x = jax.random.normal(kx, (N, input_channels, L), jnp.float32)
    params = init_params(kp, input_channels, n_channels, kernel_size,
                         n_outputs)

    prepared = prepare_params(params, input_channels)
    out, haar_out = tcn_forward(x, prepared)
    jax.block_until_ready((out, haar_out))

    # Reference is full-f32 (HIGHEST); the kernel uses the MXU's default
    # (bf16-pass, f32-accumulate) precision per the perf review, so allow a
    # correspondingly looser -- but still tight -- tolerance.
    ref_out, ref_haar = ref_forward(x, params)
    np.testing.assert_allclose(np.asarray(out), np.asarray(ref_out),
                               rtol=1e-2, atol=1e-2)
    np.testing.assert_allclose(np.asarray(haar_out), np.asarray(ref_haar),
                               rtol=1e-2, atol=1e-2)
    print("KERNEL_OK")
</pallas_src>

<mosaic_0001>
module attributes {stable_mosaic.version = 11 : i64} {
  func.func @kernel(%arg0: i32, %arg1: memref<1x8x16xf32, #tpu.memory_space<vmem>>, %arg2: memref<16x24xf32, #tpu.memory_space<vmem>>, %arg3: memref<16x1xf32, #tpu.memory_space<vmem>>, %arg4: memref<16x48xf32, #tpu.memory_space<vmem>>, %arg5: memref<16x1xf32, #tpu.memory_space<vmem>>, %arg6: memref<16x8xf32, #tpu.memory_space<vmem>>, %arg7: memref<16x1xf32, #tpu.memory_space<vmem>>, %arg8: memref<8x48xf32, #tpu.memory_space<vmem>>, %arg9: memref<8x1xf32, #tpu.memory_space<vmem>>, %arg10: memref<8x24xf32, #tpu.memory_space<vmem>>, %arg11: memref<8x1xf32, #tpu.memory_space<vmem>>, %arg12: memref<8x16xf32, #tpu.memory_space<vmem>>, %arg13: memref<8x1xf32, #tpu.memory_space<vmem>>, %arg14: memref<8x24xf32, #tpu.memory_space<vmem>>, %arg15: memref<8x1xf32, #tpu.memory_space<vmem>>, %arg16: memref<8x24xf32, #tpu.memory_space<vmem>>, %arg17: memref<8x1xf32, #tpu.memory_space<vmem>>, %arg18: memref<8x1xf32, #tpu.memory_space<vmem>>, %arg19: memref<8x1xf32, #tpu.memory_space<vmem>>, %arg20: memref<5x8xf32, #tpu.memory_space<vmem>>, %arg21: memref<5x1xf32, #tpu.memory_space<vmem>>, %arg22: memref<16x1xf32, #tpu.memory_space<vmem>>, %arg23: memref<16x1xf32, #tpu.memory_space<vmem>>, %arg24: memref<1x5x16xf32, #tpu.memory_space<vmem>>, %arg25: memref<1x16x1xf32, #tpu.memory_space<vmem>>, %arg26: memref<16x24xf32, #tpu.memory_space<vmem>>) attributes {dimension_semantics = [#tpu.dimension_semantics<parallel>], iteration_bounds = array<i64: 2>, scalar_prefetch = 0 : i64, scratch_operands = 1 : i64, tpu.core_type = #tpu.core_type<tc>, window_params = [{transform_indices = @transform_0, window_bounds = array<i64: 1, 8, 16>}, {pipeline_mode = #tpu.pipeline_mode<synchronous>, transform_indices = @transform_1, window_bounds = array<i64: 16, 24>}, {pipeline_mode = #tpu.pipeline_mode<synchronous>, transform_indices = @transform_2, window_bounds = array<i64: 16, 1>}, {pipeline_mode = #tpu.pipeline_mode<synchronous>, transform_indices = @transform_3, window_bounds = array<i64: 16, 48>}, {pipeline_mode = #tpu.pipeline_mode<synchronous>, transform_indices = @transform_4, window_bounds = array<i64: 16, 1>}, {pipeline_mode = #tpu.pipeline_mode<synchronous>, transform_indices = @transform_5, window_bounds = array<i64: 16, 8>}, {pipeline_mode = #tpu.pipeline_mode<synchronous>, transform_indices = @transform_6, window_bounds = array<i64: 16, 1>}, {pipeline_mode = #tpu.pipeline_mode<synchronous>, transform_indices = @transform_7, window_bounds = array<i64: 8, 48>}, {pipeline_mode = #tpu.pipeline_mode<synchronous>, transform_indices = @transform_8, window_bounds = array<i64: 8, 1>}, {pipeline_mode = #tpu.pipeline_mode<synchronous>, transform_indices = @transform_9, window_bounds = array<i64: 8, 24>}, {pipeline_mode = #tpu.pipeline_mode<synchronous>, transform_indices = @transform_10, window_bounds = array<i64: 8, 1>}, {pipeline_mode = #tpu.pipeline_mode<synchronous>, transform_indices = @transform_11, window_bounds = array<i64: 8, 16>}, {pipeline_mode = #tpu.pipeline_mode<synchronous>, transform_indices = @transform_12, window_bounds = array<i64: 8, 1>}, {pipeline_mode = #tpu.pipeline_mode<synchronous>, transform_indices = @transform_13, window_bounds = array<i64: 8, 24>}, {pipeline_mode = #tpu.pipeline_mode<synchronous>, transform_indices = @transform_14, window_bounds = array<i64: 8, 1>}, {pipeline_mode = #tpu.pipeline_mode<synchronous>, transform_indices = @transform_15, window_bounds = array<i64: 8, 24>}, {pipeline_mode = #tpu.pipeline_mode<synchronous>, transform_indices = @transform_16, window_bounds = array<i64: 8, 1>}, {pipeline_mode = #tpu.pipeline_mode<synchronous>, transform_indices = @transform_17, window_bounds = array<i64: 8, 1>}, {pipeline_mode = #tpu.pipeline_mode<synchronous>, transform_indices = @transform_18, window_bounds = array<i64: 8, 1>}, {pipeline_mode = #tpu.pipeline_mode<synchronous>, transform_indices = @transform_19, window_bounds = array<i64: 5, 8>}, {pipeline_mode = #tpu.pipeline_mode<synchronous>, transform_indices = @transform_20, window_bounds = array<i64: 5, 1>}, {pipeline_mode = #tpu.pipeline_mode<synchronous>, transform_indices = @transform_21, window_bounds = array<i64: 16, 1>}, {pipeline_mode = #tpu.pipeline_mode<synchronous>, transform_indices = @transform_22, window_bounds = array<i64: 16, 1>}, {transform_indices = @transform_23, window_bounds = array<i64: 1, 5, 16>}, {transform_indices = @transform_24, window_bounds = array<i64: 1, 16, 1>}]} {
    %cst = arith.constant 0.000000e+00 : f32
    %0 = vector.broadcast %cst : f32 to vector<16x8xf32>
    %c0 = arith.constant 0 : index
    %c0_0 = arith.constant 0 : index
    %1 = vector.load %arg26[%c0, %c0_0] : memref<16x24xf32, #tpu.memory_space<vmem>>, vector<16x8xf32>
    tpu.vector_store %arg26[%c0, %c0_0], %0 {strides = array<i32>} : memref<16x24xf32, #tpu.memory_space<vmem>>, vector<16x8xf32>,
    %c0_1 = arith.constant 0 : index
    %c0_2 = arith.constant 0 : index
    %c0_3 = arith.constant 0 : index
    %2 = vector.load %arg1[%c0_1, %c0_2, %c0_3] : memref<1x8x16xf32, #tpu.memory_space<vmem>>, vector<1x8x16xf32>
    %3 = vector.shape_cast %2 : vector<1x8x16xf32> to vector<8x16xf32>
    %c0_4 = arith.constant 0 : index
    %c8 = arith.constant 8 : index
    %4 = vector.load %arg26[%c0_4, %c8] : memref<16x24xf32, #tpu.memory_space<vmem>>, vector<8x16xf32>
    tpu.vector_store %arg26[%c0_4, %c8], %3 {strides = array<i32>} : memref<16x24xf32, #tpu.memory_space<vmem>>, vector<8x16xf32>,
    %c0_5 = arith.constant 0 : index
    %c6 = arith.constant 6 : index
    %5 = vector.load %arg26[%c0_5, %c6] : memref<16x24xf32, #tpu.memory_space<vmem>>, vector<8x16xf32>
    %c0_6 = arith.constant 0 : index
    %c7 = arith.constant 7 : index
    %6 = vector.load %arg26[%c0_6, %c7] : memref<16x24xf32, #tpu.memory_space<vmem>>, vector<8x16xf32>
    %7 = tpu.concatenate %5, %6, %3 in 0 : vector<8x16xf32>, vector<8x16xf32>, vector<8x16xf32> -> vector<24x16xf32>
    %c0_7 = arith.constant 0 : index
    %c0_8 = arith.constant 0 : index
    %8 = vector.load %arg2[%c0_7, %c0_8] : memref<16x24xf32, #tpu.memory_space<vmem>>, vector<16x24xf32>
    %cst_9 = arith.constant dense<0.000000e+00> : vector<16x16xf32>
    %9 = tpu.matmul %8, %7, %cst_9 {dimension_numbers = #tpu.dot_dimension_numbers<[1], [0], [0], [1], [0, 0, 1, 1], [], []>} : vector<16x24xf32>, vector<24x16xf32>, vector<16x16xf32> -> vector<16x16xf32>
    %c0_10 = arith.constant 0 : index
    %c0_11 = arith.constant 0 : index
    %10 = vector.load %arg3[%c0_10, %c0_11] : memref<16x1xf32, #tpu.memory_space<vmem>>, vector<16x1xf32>
    %11 = vector.broadcast %10 : vector<16x1xf32> to vector<16x16xf32>
    %12 = arith.addf %9, %11 : vector<16x16xf32>
    %cst_12 = arith.constant 0.000000e+00 : f32
    %13 = vector.broadcast %cst_12 : f32 to vector<16x16xf32>
    %14 = arith.maximumf %12, %13 : vector<16x16xf32>
    %c0_13 = arith.constant 0 : index
    %c8_14 = arith.constant 8 : index
    %15 = vector.load %arg26[%c0_13, %c8_14] : memref<16x24xf32, #tpu.memory_space<vmem>>, vector<16x16xf32>
    tpu.vector_store %arg26[%c0_13, %c8_14], %14 {strides = array<i32>} : memref<16x24xf32, #tpu.memory_space<vmem>>, vector<16x16xf32>,
    %c0_15 = arith.constant 0 : index
    %c6_16 = arith.constant 6 : index
    %16 = vector.load %arg26[%c0_15, %c6_16] : memref<16x24xf32, #tpu.memory_space<vmem>>, vector<16x16xf32>
    %c0_17 = arith.constant 0 : index
    %c7_18 = arith.constant 7 : index
    %17 = vector.load %arg26[%c0_17, %c7_18] : memref<16x24xf32, #tpu.memory_space<vmem>>, vector<16x16xf32>
    %18 = tpu.concatenate %16, %17, %14 in 0 : vector<16x16xf32>, vector<16x16xf32>, vector<16x16xf32> -> vector<48x16xf32>
    %c0_19 = arith.constant 0 : index
    %c0_20 = arith.constant 0 : index
    %19 = vector.load %arg4[%c0_19, %c0_20] : memref<16x48xf32, #tpu.memory_space<vmem>>, vector<16x48xf32>
    %cst_21 = arith.constant dense<0.000000e+00> : vector<16x16xf32>
    %20 = tpu.matmul %19, %18, %cst_21 {dimension_numbers = #tpu.dot_dimension_numbers<[1], [0], [0], [1], [0, 0, 1, 1], [], []>} : vector<16x48xf32>, vector<48x16xf32>, vector<16x16xf32> -> vector<16x16xf32>
    %c0_22 = arith.constant 0 : index
    %c0_23 = arith.constant 0 : index
    %21 = vector.load %arg5[%c0_22, %c0_23] : memref<16x1xf32, #tpu.memory_space<vmem>>, vector<16x1xf32>
    %22 = vector.broadcast %21 : vector<16x1xf32> to vector<16x16xf32>
    %23 = arith.addf %20, %22 : vector<16x16xf32>
    %cst_24 = arith.constant 0.000000e+00 : f32
    %24 = vector.broadcast %cst_24 : f32 to vector<16x16xf32>
    %25 = arith.maximumf %23, %24 : vector<16x16xf32>
    %c0_25 = arith.constant 0 : index
    %c0_26 = arith.constant 0 : index
    %26 = vector.load %arg6[%c0_25, %c0_26] : memref<16x8xf32, #tpu.memory_space<vmem>>, vector<16x8xf32>
    %cst_27 = arith.constant dense<0.000000e+00> : vector<16x16xf32>
    %27 = tpu.matmul %26, %3, %cst_27 {dimension_numbers = #tpu.dot_dimension_numbers<[1], [0], [0], [1], [0, 0, 1, 1], [], []>} : vector<16x8xf32>, vector<8x16xf32>, vector<16x16xf32> -> vector<16x16xf32>
    %c0_28 = arith.constant 0 : index
    %c0_29 = arith.constant 0 : index
    %28 = vector.load %arg7[%c0_28, %c0_29] : memref<16x1xf32, #tpu.memory_space<vmem>>, vector<16x1xf32>
    %29 = vector.broadcast %28 : vector<16x1xf32> to vector<16x16xf32>
    %30 = arith.addf %27, %29 : vector<16x16xf32>
    %31 = arith.addf %25, %30 : vector<16x16xf32>
    %cst_30 = arith.constant 0.000000e+00 : f32
    %32 = vector.broadcast %cst_30 : f32 to vector<16x16xf32>
    %33 = arith.maximumf %31, %32 : vector<16x16xf32>
    %c0_31 = arith.constant 0 : index
    %c8_32 = arith.constant 8 : index
    %34 = vector.load %arg26[%c0_31, %c8_32] : memref<16x24xf32, #tpu.memory_space<vmem>>, vector<16x16xf32>
    tpu.vector_store %arg26[%c0_31, %c8_32], %33 {strides = array<i32>} : memref<16x24xf32, #tpu.memory_space<vmem>>, vector<16x16xf32>,
    %c0_33 = arith.constant 0 : index
    %c4 = arith.constant 4 : index
    %35 = vector.load %arg26[%c0_33, %c4] : memref<16x24xf32, #tpu.memory_space<vmem>>, vector<16x16xf32>
    %c0_34 = arith.constant 0 : index
    %c6_35 = arith.constant 6 : index
    %36 = vector.load %arg26[%c0_34, %c6_35] : memref<16x24xf32, #tpu.memory_space<vmem>>, vector<16x16xf32>
    %37 = tpu.concatenate %35, %36, %33 in 0 : vector<16x16xf32>, vector<16x16xf32>, vector<16x16xf32> -> vector<48x16xf32>
    %c0_36 = arith.constant 0 : index
    %c0_37 = arith.constant 0 : index
    %38 = vector.load %arg8[%c0_36, %c0_37] : memref<8x48xf32, #tpu.memory_space<vmem>>, vector<8x48xf32>
    %cst_38 = arith.constant dense<0.000000e+00> : vector<8x16xf32>
    %39 = tpu.matmul %38, %37, %cst_38 {dimension_numbers = #tpu.dot_dimension_numbers<[1], [0], [0], [1], [0, 0, 1, 1], [], []>} : vector<8x48xf32>, vector<48x16xf32>, vector<8x16xf32> -> vector<8x16xf32>
    %c0_39 = arith.constant 0 : index
    %c0_40 = arith.constant 0 : index
    %40 = vector.load %arg9[%c0_39, %c0_40] : memref<8x1xf32, #tpu.memory_space<vmem>>, vector<8x1xf32>
    %41 = vector.broadcast %40 : vector<8x1xf32> to vector<8x16xf32>
    %42 = arith.addf %39, %41 : vector<8x16xf32>
    %cst_41 = arith.constant 0.000000e+00 : f32
    %43 = vector.broadcast %cst_41 : f32 to vector<8x16xf32>
    %44 = arith.maximumf %42, %43 : vector<8x16xf32>
    %c0_42 = arith.constant 0 : index
    %c8_43 = arith.constant 8 : index
    %45 = vector.load %arg26[%c0_42, %c8_43] : memref<16x24xf32, #tpu.memory_space<vmem>>, vector<8x16xf32>
    tpu.vector_store %arg26[%c0_42, %c8_43], %44 {strides = array<i32>} : memref<16x24xf32, #tpu.memory_space<vmem>>, vector<8x16xf32>,
    %c0_44 = arith.constant 0 : index
    %c4_45 = arith.constant 4 : index
    %46 = vector.load %arg26[%c0_44, %c4_45] : memref<16x24xf32, #tpu.memory_space<vmem>>, vector<8x16xf32>
    %c0_46 = arith.constant 0 : index
    %c6_47 = arith.constant 6 : index
    %47 = vector.load %arg26[%c0_46, %c6_47] : memref<16x24xf32, #tpu.memory_space<vmem>>, vector<8x16xf32>
    %48 = tpu.concatenate %46, %47, %44 in 0 : vector<8x16xf32>, vector<8x16xf32>, vector<8x16xf32> -> vector<24x16xf32>
    %c0_48 = arith.constant 0 : index
    %c0_49 = arith.constant 0 : index
    %49 = vector.load %arg10[%c0_48, %c0_49] : memref<8x24xf32, #tpu.memory_space<vmem>>, vector<8x24xf32>
    %cst_50 = arith.constant dense<0.000000e+00> : vector<8x16xf32>
    %50 = tpu.matmul %49, %48, %cst_50 {dimension_numbers = #tpu.dot_dimension_numbers<[1], [0], [0], [1], [0, 0, 1, 1], [], []>} : vector<8x24xf32>, vector<24x16xf32>, vector<8x16xf32> -> vector<8x16xf32>
    %c0_51 = arith.constant 0 : index
    %c0_52 = arith.constant 0 : index
    %51 = vector.load %arg11[%c0_51, %c0_52] : memref<8x1xf32, #tpu.memory_space<vmem>>, vector<8x1xf32>
    %52 = vector.broadcast %51 : vector<8x1xf32> to vector<8x16xf32>
    %53 = arith.addf %50, %52 : vector<8x16xf32>
    %cst_53 = arith.constant 0.000000e+00 : f32
    %54 = vector.broadcast %cst_53 : f32 to vector<8x16xf32>
    %55 = arith.maximumf %53, %54 : vector<8x16xf32>
    %c0_54 = arith.constant 0 : index
    %c0_55 = arith.constant 0 : index
    %56 = vector.load %arg12[%c0_54, %c0_55] : memref<8x16xf32, #tpu.memory_space<vmem>>, vector<8x16xf32>
    %cst_56 = arith.constant dense<0.000000e+00> : vector<8x16xf32>
    %57 = tpu.matmul %56, %33, %cst_56 {dimension_numbers = #tpu.dot_dimension_numbers<[1], [0], [0], [1], [0, 0, 1, 1], [], []>} : vector<8x16xf32>, vector<16x16xf32>, vector<8x16xf32> -> vector<8x16xf32>
    %c0_57 = arith.constant 0 : index
    %c0_58 = arith.constant 0 : index
    %58 = vector.load %arg13[%c0_57, %c0_58] : memref<8x1xf32, #tpu.memory_space<vmem>>, vector<8x1xf32>
    %59 = vector.broadcast %58 : vector<8x1xf32> to vector<8x16xf32>
    %60 = arith.addf %57, %59 : vector<8x16xf32>
    %61 = arith.addf %55, %60 : vector<8x16xf32>
    %cst_59 = arith.constant 0.000000e+00 : f32
    %62 = vector.broadcast %cst_59 : f32 to vector<8x16xf32>
    %63 = arith.maximumf %61, %62 : vector<8x16xf32>
    %c0_60 = arith.constant 0 : index
    %c8_61 = arith.constant 8 : index
    %64 = vector.load %arg26[%c0_60, %c8_61] : memref<16x24xf32, #tpu.memory_space<vmem>>, vector<8x16xf32>
    tpu.vector_store %arg26[%c0_60, %c8_61], %63 {strides = array<i32>} : memref<16x24xf32, #tpu.memory_space<vmem>>, vector<8x16xf32>,
    %c0_62 = arith.constant 0 : index
    %c0_63 = arith.constant 0 : index
    %65 = vector.load %arg26[%c0_62, %c0_63] : memref<16x24xf32, #tpu.memory_space<vmem>>, vector<8x16xf32>
    %c0_64 = arith.constant 0 : index
    %c4_65 = arith.constant 4 : index
    %66 = vector.load %arg26[%c0_64, %c4_65] : memref<16x24xf32, #tpu.memory_space<vmem>>, vector<8x16xf32>
    %67 = tpu.concatenate %65, %66, %63 in 0 : vector<8x16xf32>, vector<8x16xf32>, vector<8x16xf32> -> vector<24x16xf32>
    %c0_66 = arith.constant 0 : index
    %c0_67 = arith.constant 0 : index
    %68 = vector.load %arg14[%c0_66, %c0_67] : memref<8x24xf32, #tpu.memory_space<vmem>>, vector<8x24xf32>
    %cst_68 = arith.constant dense<0.000000e+00> : vector<8x16xf32>
    %69 = tpu.matmul %68, %67, %cst_68 {dimension_numbers = #tpu.dot_dimension_numbers<[1], [0], [0], [1], [0, 0, 1, 1], [], []>} : vector<8x24xf32>, vector<24x16xf32>, vector<8x16xf32> -> vector<8x16xf32>
    %c0_69 = arith.constant 0 : index
    %c0_70 = arith.constant 0 : index
    %70 = vector.load %arg15[%c0_69, %c0_70] : memref<8x1xf32, #tpu.memory_space<vmem>>, vector<8x1xf32>
    %71 = vector.broadcast %70 : vector<8x1xf32> to vector<8x16xf32>
    %72 = arith.addf %69, %71 : vector<8x16xf32>
    %cst_71 = arith.constant 0.000000e+00 : f32
    %73 = vector.broadcast %cst_71 : f32 to vector<8x16xf32>
    %74 = arith.maximumf %72, %73 : vector<8x16xf32>
    %c0_72 = arith.constant 0 : index
    %c8_73 = arith.constant 8 : index
    %75 = vector.load %arg26[%c0_72, %c8_73] : memref<16x24xf32, #tpu.memory_space<vmem>>, vector<8x16xf32>
    tpu.vector_store %arg26[%c0_72, %c8_73], %74 {strides = array<i32>} : memref<16x24xf32, #tpu.memory_space<vmem>>, vector<8x16xf32>,
    %c0_74 = arith.constant 0 : index
    %c0_75 = arith.constant 0 : index
    %76 = vector.load %arg26[%c0_74, %c0_75] : memref<16x24xf32, #tpu.memory_space<vmem>>, vector<8x16xf32>
    %c0_76 = arith.constant 0 : index
    %c4_77 = arith.constant 4 : index
    %77 = vector.load %arg26[%c0_76, %c4_77] : memref<16x24xf32, #tpu.memory_space<vmem>>, vector<8x16xf32>
    %78 = tpu.concatenate %76, %77, %74 in 0 : vector<8x16xf32>, vector<8x16xf32>, vector<8x16xf32> -> vector<24x16xf32>
    %c0_78 = arith.constant 0 : index
    %c0_79 = arith.constant 0 : index
    %79 = vector.load %arg16[%c0_78, %c0_79] : memref<8x24xf32, #tpu.memory_space<vmem>>, vector<8x24xf32>
    %cst_80 = arith.constant dense<0.000000e+00> : vector<8x16xf32>
    %80 = tpu.matmul %79, %78, %cst_80 {dimension_numbers = #tpu.dot_dimension_numbers<[1], [0], [0], [1], [0, 0, 1, 1], [], []>} : vector<8x24xf32>, vector<24x16xf32>, vector<8x16xf32> -> vector<8x16xf32>
    %c0_81 = arith.constant 0 : index
    %c0_82 = arith.constant 0 : index
    %81 = vector.load %arg17[%c0_81, %c0_82] : memref<8x1xf32, #tpu.memory_space<vmem>>, vector<8x1xf32>
    %82 = vector.broadcast %81 : vector<8x1xf32> to vector<8x16xf32>
    %83 = arith.addf %80, %82 : vector<8x16xf32>
    %cst_83 = arith.constant 0.000000e+00 : f32
    %84 = vector.broadcast %cst_83 : f32 to vector<8x16xf32>
    %85 = arith.maximumf %83, %84 : vector<8x16xf32>
    %86 = arith.addf %85, %63 : vector<8x16xf32>
    %cst_84 = arith.constant 0.000000e+00 : f32
    %87 = vector.broadcast %cst_84 : f32 to vector<8x16xf32>
    %88 = arith.maximumf %86, %87 : vector<8x16xf32>
    %c0_85 = arith.constant 0 : index
    %c0_86 = arith.constant 0 : index
    %89 = vector.load %arg18[%c0_85, %c0_86] : memref<8x1xf32, #tpu.memory_space<vmem>>, vector<8x1xf32>
    %90 = vector.broadcast %89 : vector<8x1xf32> to vector<8x16xf32>
    %91 = arith.mulf %88, %90 : vector<8x16xf32>
    %c0_87 = arith.constant 0 : index
    %c0_88 = arith.constant 0 : index
    %92 = vector.load %arg19[%c0_87, %c0_88] : memref<8x1xf32, #tpu.memory_space<vmem>>, vector<8x1xf32>
    %93 = vector.broadcast %92 : vector<8x1xf32> to vector<8x16xf32>
    %94 = arith.addf %91, %93 : vector<8x16xf32>
    %c0_89 = arith.constant 0 : index
    %c0_90 = arith.constant 0 : index
    %95 = vector.load %arg20[%c0_89, %c0_90] : memref<5x8xf32, #tpu.memory_space<vmem>>, vector<5x8xf32>
    %cst_91 = arith.constant dense<0.000000e+00> : vector<5x16xf32>
    %96 = tpu.matmul %95, %94, %cst_91 {dimension_numbers = #tpu.dot_dimension_numbers<[1], [0], [0], [1], [0, 0, 1, 1], [], []>} : vector<5x8xf32>, vector<8x16xf32>, vector<5x16xf32> -> vector<5x16xf32>
    %c0_92 = arith.constant 0 : index
    %c0_93 = arith.constant 0 : index
    %97 = vector.load %arg21[%c0_92, %c0_93] : memref<5x1xf32, #tpu.memory_space<vmem>>, vector<5x1xf32>
    %98 = vector.broadcast %97 : vector<5x1xf32> to vector<5x16xf32>
    %99 = arith.addf %96, %98 : vector<5x16xf32>
    %c0_94 = arith.constant 0 : index
    %c0_95 = arith.constant 0 : index
    %c0_96 = arith.constant 0 : index
    %100 = vector.load %arg24[%c0_94, %c0_95, %c0_96] : memref<1x5x16xf32, #tpu.memory_space<vmem>>, vector<1x5x16xf32>
    %101 = vector.shape_cast %100 : vector<1x5x16xf32> to vector<5x16xf32>
    %102 = vector.shape_cast %99 : vector<5x16xf32> to vector<1x5x16xf32>
    tpu.vector_store %arg24[%c0_94, %c0_95, %c0_96], %102 {strides = array<i32>} : memref<1x5x16xf32, #tpu.memory_space<vmem>>, vector<1x5x16xf32>,
    %c0_97 = arith.constant 0 : index
    %c0_98 = arith.constant 0 : index
    %c15 = arith.constant 15 : index
    %103 = vector.load %arg1[%c0_97, %c0_98, %c15] : memref<1x8x16xf32, #tpu.memory_space<vmem>>, vector<1x8x1xf32>
    %104 = vector.shape_cast %103 : vector<1x8x1xf32> to vector<8x1xf32>
    %c0_99 = arith.constant 0 : index
    %c0_100 = arith.constant 0 : index
    %c14 = arith.constant 14 : index
    %105 = vector.load %arg1[%c0_99, %c0_100, %c14] : memref<1x8x16xf32, #tpu.memory_space<vmem>>, vector<1x8x1xf32>
    %106 = vector.shape_cast %105 : vector<1x8x1xf32> to vector<8x1xf32>
    %107 = arith.subf %106, %104 : vector<8x1xf32>
    %cst_101 = arith.constant 0.707106769 : f32
    %108 = vector.broadcast %cst_101 : f32 to vector<8x1xf32>
    %109 = arith.mulf %107, %108 : vector<8x1xf32>
    %110 = tpu.concatenate %104, %109 in 0 : vector<8x1xf32>, vector<8x1xf32> -> vector<16x1xf32>
    %c0_102 = arith.constant 0 : index
    %c0_103 = arith.constant 0 : index
    %111 = vector.load %arg22[%c0_102, %c0_103] : memref<16x1xf32, #tpu.memory_space<vmem>>, vector<16x1xf32>
    %112 = arith.mulf %110, %111 : vector<16x1xf32>
    %c0_104 = arith.constant 0 : index
    %c0_105 = arith.constant 0 : index
    %113 = vector.load %arg23[%c0_104, %c0_105] : memref<16x1xf32, #tpu.memory_space<vmem>>, vector<16x1xf32>
    %114 = arith.addf %112, %113 : vector<16x1xf32>
    %c0_106 = arith.constant 0 : index
    %c0_107 = arith.constant 0 : index
    %c0_108 = arith.constant 0 : index
    %115 = vector.load %arg25[%c0_106, %c0_107, %c0_108] : memref<1x16x1xf32, #tpu.memory_space<vmem>>, vector<1x16x1xf32>
    %116 = vector.shape_cast %115 : vector<1x16x1xf32> to vector<16x1xf32>
    %117 = vector.shape_cast %114 : vector<16x1xf32> to vector<1x16x1xf32>
    tpu.vector_store %arg25[%c0_106, %c0_107, %c0_108], %117 {strides = array<i32>} : memref<1x16x1xf32, #tpu.memory_space<vmem>>, vector<1x16x1xf32>,
    return
  }
  func.func @transform_0(%arg0: i32) -> (i32, i32, i32) {
    %c0_i32 = arith.constant 0 : i32
    %c0_i32_0 = arith.constant 0 : i32
    %c0_i32_1 = arith.constant 0 : i32
    return %arg0, %c0_i32, %c0_i32_0 : i32, i32, i32
  }
  func.func @transform_1(%arg0: i32) -> (i32, i32) {
    %c0_i32 = arith.constant 0 : i32
    %c0_i32_0 = arith.constant 0 : i32
    %c0_i32_1 = arith.constant 0 : i32
    return %c0_i32, %c0_i32_0 : i32, i32
  }
  func.func @transform_2(%arg0: i32) -> (i32, i32) {
    %c0_i32 = arith.constant 0 : i32
    %c0_i32_0 = arith.constant 0 : i32
    %c0_i32_1 = arith.constant 0 : i32
    return %c0_i32, %c0_i32_0 : i32, i32
  }
  func.func @transform_3(%arg0: i32) -> (i32, i32) {
    %c0_i32 = arith.constant 0 : i32
    %c0_i32_0 = arith.constant 0 : i32
    %c0_i32_1 = arith.constant 0 : i32
    return %c0_i32, %c0_i32_0 : i32, i32
  }
  func.func @transform_4(%arg0: i32) -> (i32, i32) {
    %c0_i32 = arith.constant 0 : i32
    %c0_i32_0 = arith.constant 0 : i32
    %c0_i32_1 = arith.constant 0 : i32
    return %c0_i32, %c0_i32_0 : i32, i32
  }
  func.func @transform_5(%arg0: i32) -> (i32, i32) {
    %c0_i32 = arith.constant 0 : i32
    %c0_i32_0 = arith.constant 0 : i32
    %c0_i32_1 = arith.constant 0 : i32
    return %c0_i32, %c0_i32_0 : i32, i32
  }
  func.func @transform_6(%arg0: i32) -> (i32, i32) {
    %c0_i32 = arith.constant 0 : i32
    %c0_i32_0 = arith.constant 0 : i32
    %c0_i32_1 = arith.constant 0 : i32
    return %c0_i32, %c0_i32_0 : i32, i32
  }
  func.func @transform_7(%arg0: i32) -> (i32, i32) {
    %c0_i32 = arith.constant 0 : i32
    %c0_i32_0 = arith.constant 0 : i32
    %c0_i32_1 = arith.constant 0 : i32
    return %c0_i32, %c0_i32_0 : i32, i32
  }
  func.func @transform_8(%arg0: i32) -> (i32, i32) {
    %c0_i32 = arith.constant 0 : i32
    %c0_i32_0 = arith.constant 0 : i32
    %c0_i32_1 = arith.constant 0 : i32
    return %c0_i32, %c0_i32_0 : i32, i32
  }
  func.func @transform_9(%arg0: i32) -> (i32, i32) {
    %c0_i32 = arith.constant 0 : i32
    %c0_i32_0 = arith.constant 0 : i32
    %c0_i32_1 = arith.constant 0 : i32
    return %c0_i32, %c0_i32_0 : i32, i32
  }
  func.func @transform_10(%arg0: i32) -> (i32, i32) {
    %c0_i32 = arith.constant 0 : i32
    %c0_i32_0 = arith.constant 0 : i32
    %c0_i32_1 = arith.constant 0 : i32
    return %c0_i32, %c0_i32_0 : i32, i32
  }
  func.func @transform_11(%arg0: i32) -> (i32, i32) {
    %c0_i32 = arith.constant 0 : i32
    %c0_i32_0 = arith.constant 0 : i32
    %c0_i32_1 = arith.constant 0 : i32
    return %c0_i32, %c0_i32_0 : i32, i32
  }
  func.func @transform_12(%arg0: i32) -> (i32, i32) {
    %c0_i32 = arith.constant 0 : i32
    %c0_i32_0 = arith.constant 0 : i32
    %c0_i32_1 = arith.constant 0 : i32
    return %c0_i32, %c0_i32_0 : i32, i32
  }
  func.func @transform_13(%arg0: i32) -> (i32, i32) {
    %c0_i32 = arith.constant 0 : i32
    %c0_i32_0 = arith.constant 0 : i32
    %c0_i32_1 = arith.constant 0 : i32
    return %c0_i32, %c0_i32_0 : i32, i32
  }
  func.func @transform_14(%arg0: i32) -> (i32, i32) {
    %c0_i32 = arith.constant 0 : i32
    %c0_i32_0 = arith.constant 0 : i32
    %c0_i32_1 = arith.constant 0 : i32
    return %c0_i32, %c0_i32_0 : i32, i32
  }
  func.func @transform_15(%arg0: i32) -> (i32, i32) {
    %c0_i32 = arith.constant 0 : i32
    %c0_i32_0 = arith.constant 0 : i32
    %c0_i32_1 = arith.constant 0 : i32
    return %c0_i32, %c0_i32_0 : i32, i32
  }
  func.func @transform_16(%arg0: i32) -> (i32, i32) {
    %c0_i32 = arith.constant 0 : i32
    %c0_i32_0 = arith.constant 0 : i32
    %c0_i32_1 = arith.constant 0 : i32
    return %c0_i32, %c0_i32_0 : i32, i32
  }
  func.func @transform_17(%arg0: i32) -> (i32, i32) {
    %c0_i32 = arith.constant 0 : i32
    %c0_i32_0 = arith.constant 0 : i32
    %c0_i32_1 = arith.constant 0 : i32
    return %c0_i32, %c0_i32_0 : i32, i32
  }
  func.func @transform_18(%arg0: i32) -> (i32, i32) {
    %c0_i32 = arith.constant 0 : i32
    %c0_i32_0 = arith.constant 0 : i32
    %c0_i32_1 = arith.constant 0 : i32
    return %c0_i32, %c0_i32_0 : i32, i32
  }
  func.func @transform_19(%arg0: i32) -> (i32, i32) {
    %c0_i32 = arith.constant 0 : i32
    %c0_i32_0 = arith.constant 0 : i32
    %c0_i32_1 = arith.constant 0 : i32
    return %c0_i32, %c0_i32_0 : i32, i32
  }
  func.func @transform_20(%arg0: i32) -> (i32, i32) {
    %c0_i32 = arith.constant 0 : i32
    %c0_i32_0 = arith.constant 0 : i32
    %c0_i32_1 = arith.constant 0 : i32
    return %c0_i32, %c0_i32_0 : i32, i32
  }
  func.func @transform_21(%arg0: i32) -> (i32, i32) {
    %c0_i32 = arith.constant 0 : i32
    %c0_i32_0 = arith.constant 0 : i32
    %c0_i32_1 = arith.constant 0 : i32
    return %c0_i32, %c0_i32_0 : i32, i32
  }
  func.func @transform_22(%arg0: i32) -> (i32, i32) {
    %c0_i32 = arith.constant 0 : i32
    %c0_i32_0 = arith.constant 0 : i32
    %c0_i32_1 = arith.constant 0 : i32
    return %c0_i32, %c0_i32_0 : i32, i32
  }
  func.func @transform_23(%arg0: i32) -> (i32, i32, i32) {
    %c0_i32 = arith.constant 0 : i32
    %c0_i32_0 = arith.constant 0 : i32
    %c0_i32_1 = arith.constant 0 : i32
    return %arg0, %c0_i32, %c0_i32_0 : i32, i32, i32
  }
  func.func @transform_24(%arg0: i32) -> (i32, i32, i32) {
    %c0_i32 = arith.constant 0 : i32
    %c0_i32_0 = arith.constant 0 : i32
    %c0_i32_1 = arith.constant 0 : i32
    return %arg0, %c0_i32, %c0_i32_0 : i32, i32, i32
  }
}

</mosaic_0001>

<bundles_post_ra>
// kernel: tpu_custom_call.1
= control target key start
LH: loop header
LB: loop body
LE: loop exit
PB: predicated region body
PF: predicated region fallthrough
CT: control target
= control target key end

     0   :  { %s2458_s0 = inlined_call_operand.vmem [shape: f32[2,8,16], index: 0, kind: input, shape index: {}]   ;;  %s2459_s1 = inlined_call_operand.vmem [shape: f32[16,24], index: 1, kind: input, shape index: {}]   ;;  %s2460_s2 = inlined_call_operand.vmem [shape: f32[16,1], index: 2, kind: input, shape index: {}]   ;;  %s2461_s3 = inlined_call_operand.vmem [shape: f32[16,48], index: 3, kind: input, shape index: {}]   ;;  %s2462_s4 = inlined_call_operand.vmem [shape: f32[16,1], index: 4, kind: input, shape index: {}]   ;;  %s2463_s5 = inlined_call_operand.vmem [shape: f32[16,8], index: 5, kind: input, shape index: {}]   ;;  %s2464_s6 = inlined_call_operand.vmem [shape: f32[16,1], index: 6, kind: input, shape index: {}]   ;;  %s2465_s7 = inlined_call_operand.vmem [shape: f32[8,48], index: 7, kind: input, shape index: {}]   ;;  %s2466_s8 = inlined_call_operand.vmem [shape: f32[8,1], index: 8, kind: input, shape index: {}]   ;;  %s2467_s9 = inlined_call_operand.vmem [shape: f32[8,24], index: 9, kind: input, shape index: {}]   ;;  %s2468_s10 = inlined_call_operand.vmem [shape: f32[8,1], index: 10, kind: input, shape index: {}]   ;;  %s2469_s11 = inlined_call_operand.vmem [shape: f32[8,16], index: 11, kind: input, shape index: {}]   ;;  %s2470_s12 = inlined_call_operand.vmem [shape: f32[8,1], index: 12, kind: input, shape index: {}]   ;;  %s2471_s13 = inlined_call_operand.vmem [shape: f32[8,24], index: 13, kind: input, shape index: {}]   ;;  %s2472_s14 = inlined_call_operand.vmem [shape: f32[8,1], index: 14, kind: input, shape index: {}]   ;;  %s2473_s15 = inlined_call_operand.vmem [shape: f32[8,24], index: 15, kind: input, shape index: {}]   ;;  %s2474_s16 = inlined_call_operand.vmem [shape: f32[8,1], index: 16, kind: input, shape index: {}]   ;;  %s2475_s17 = inlined_call_operand.vmem [shape: f32[8,1], index: 17, kind: input, shape index: {}]   ;;  %s2476_s18 = inlined_call_operand.vmem [shape: f32[8,1], index: 18, kind: input, shape index: {}]   ;;  %s2477_s19 = inlined_call_operand.vmem [shape: f32[5,8], index: 19, kind: input, shape index: {}]   ;;  %s2478_s20 = inlined_call_operand.vmem [shape: f32[5,1], index: 20, kind: input, shape index: {}]   ;;  %s2479_s21 = inlined_call_operand.vmem [shape: f32[16,1], index: 21, kind: input, shape index: {}]   ;;  %s2480_s22 = inlined_call_operand.vmem [shape: f32[16,1], index: 22, kind: input, shape index: {}]   ;;  %s2481_s23 = inlined_call_operand.vmem [shape: f32[2,5,16], index: 23, kind: output, shape index: {0}]   ;;  %s2482_s24 = inlined_call_operand.vmem [shape: f32[2,16,1], index: 24, kind: output, shape index: {1}]  }
   0x1   :  { %2496 = sst [smem:[#allocation3_spill]] %s2458_s0 }
   0x2   :  { %2497 = sst [smem:[#allocation4_spill]] %s2459_s1 }
   0x3   :  { %2498 = sst [smem:[#allocation5_spill]] %s2460_s2 }
   0x4   :  { %2499 = sst [smem:[#allocation6_spill]] %s2461_s3 }
   0x5   :  { %2500 = sst [smem:[#allocation7_spill]] %s2462_s4 }
   0x6   :  { %2501 = sst [smem:[#allocation8_spill]] %s2463_s5  ;;  %s2238_s5 = smov 0  }
   0x7   :  { %2502 = sst [smem:[#allocation9_spill]] %s2464_s6 }
   0x8   :  { %2503 = sst [smem:[#allocation10_spill]] %s2465_s7 }
   0x9   :  { %2504 = sst [smem:[#allocation11_spill]] %s2466_s8 }
   0xa LB: > { %s1823_s26 = sadd.s32 4294967295, %s2097_s5   ;;  %p1827_p0 = scmp.ge.s32.totalorder %s2097_s5, 1  ;;  %s2097_s5 = sphi %s2238_s5, %s35_s5  }
   0xb   : > { %p664_p1 = scmp.lt.s32.totalorder %s2097_s5, 3 }
   0xd   : > { %p665_p2 = pnand %p1827_p0, %p664_p1 }
   0xe   : > { %p733_p3 = scmp.lt.s32.totalorder (!%p665_p2), %s1823_s26, 1  ;;  %vm746_vm0 = vcmask (!%p665_p2), 64512   ;;  %v2099_v0 = vmov (!%p665_p2), 0.0   ;;  %s2505_s2 = sld [smem:[#allocation3_spill]] (!%p665_p2)  ;;  %vm754_vm1 = vcmask (!%p665_p2), 195648   ;;  %vm785_vm2 = vcmask (!%p665_p2), 195584  }
   0xf   : > { %668 = sbr.rel (%p665_p2) target bundleno = 3514 (0xdba), region = 112  ;;  %747 = vst.msk [vmem:[#allocation2] sm:$0xff] (!%p665_p2), %vm746_vm0, %v2099_v0  ;;  %748 = vst.msk [vmem:[#allocation2 + $0x8] sm:$0xff] (!%p665_p2), %vm746_vm0, %v2099_v0  ;;  %s2490_s0 = smov (!%p665_p2), 8   ;;  %v2104_v9 = vmov (!%p665_p2), 0   ;;  %vm923_vm3 = vcmask (!%p665_p2), 392192  }
  0x10   : > { %s2101_s7 = smov (!%p665_p2), 6   ;;  %s2493_s30 = smov (!%p665_p2), 127   ;;  %2035 = vset.pattern.permute.xlu0 (!%p665_p2), %v2104_v9  ;;  %2034 = vset.pattern.permute.xlu1 (!%p665_p2), %v2104_v9  ;;  %vm2109_vm4 = vmmov (!%p665_p2), 0   ;;  %vm1335_vm5 = vcmask (!%p665_p2), 130048   ;;  %vm1734_vm6 = vcmask (!%p665_p2), 7168   ;;  %vm1689_vm7 = vcmask (!%p665_p2), 126976  }
  0x11   : > { %s2103_s3 = smov (!%p665_p2), 122   ;;  %s2506_s4 = sld [smem:[#allocation4_spill]] (!%p665_p2) }
  0x12   : > { %s2507_s6 = sld [smem:[#allocation5_spill]] (!%p665_p2)  ;;  %s2509_s8 = sld [smem:[#allocation7_spill]] (!%p665_p2) }
  0x13   : > { %s2510_s28 = sld [smem:[#allocation9_spill]] (!%p665_p2)  ;;  %s2107_s25 = smov (!%p665_p2), 126  }
  0x14   : > { %s2513_s1 = sld [smem:[#allocation11_spill]] (!%p665_p2) }
  0x16   : > { %s2518_s26 = smov (!%p733_p3, %s1823_s26), 1 }
  0x17   : > { %s2489_s27 = sshll.u32 %s2518_s26, 3  ;;  %v762_v5 = vld [vmem:[%s2506_s4] sm:$0xff]  ;;  %v763_v16 = vld [vmem:[%s2506_s4 + $0x8] sm:$0xff]  ;;  %s2111_s4 = smov 1  }
  0x18   : > { %s736_s29 = scalar_lea.vmem %s2505_s2, %s2489_s27  ;;  %1893 = vmatprep.mubr.msk.f32.mxu0 %vm785_vm2, %v762_v5  ;;  %v765_v7 = vld [vmem:[%s2507_s6 + $0x8] sm:$0xff]  ;;  %v764_v10 = vld [vmem:[%s2507_s6] sm:$0xff]  ;;  %s2508_s2 = sld [smem:[#allocation8_spill]] }
  0x19   : > { %v2258_v1 = vld [vmem:[%s736_s29] sm:$0xff]  ;;  %v894_v34 = vld [vmem:[%s2509_s8 + $0x8] sm:$0xff]  ;;  %s2512_s29 = smov 8   ;;  %s2105_s27 = smov 4  }
  0x1a   : > { %751 = vrot.lane.b32.xlu0 %v2258_v1, %s2490_s0  ;;  %760 = vrot.lane.b32.xlu1 %v2258_v1, %s2101_s7  ;;  %v1010_v36 = vld [vmem:[%s2510_s28 + $0x8] sm:$0xff]  ;;  %v893_v42 = vld [vmem:[%s2509_s8] sm:$0xff] }
  0x1b   : > { %v1009_v45 = vld [vmem:[%s2510_s28] sm:$0xff] }
  0x1e   : > { %v1007_v17 = vld [vmem:[%s2508_s2] sm:$0xff]  ;;  %v1008_v18 = vld [vmem:[%s2508_s2 + $0x8] sm:$0xff]  ;;  %s2511_s2 = sld [smem:[#allocation6_spill]] }
  0x24   : > { %v891_v38 = vld [vmem:[%s2511_s2] sm:$0xff]  ;;  %v892_v54 = vld [vmem:[%s2511_s2 + $0x8] sm:$0xff] }
  0x25   : > { %1908 = vmatprep.mubr.msk.f32.mxu1 %vm923_vm3, %v891_v38 }
  0x8c   : > { %v752_v2 = vpop.permute.xlu0 %751  ;;  %v761_v4 = vpop.permute.xlu1 %760 }
  0x8d   : > { %755 = vst.msk [vmem:[#allocation2] sm:$0xff] %vm754_vm1, %v752_v2 }
  0x94   : > { %v756_v3 = vld [vmem:[#allocation2] sm:$0xff] }
  0x95   : > { %758 = vrot.lane.b32.xlu0 %v756_v3, %s2493_s30 }
  0x99   : > { %780 = vrot.lane.b32.xlu0 %v761_v4, %s2103_s3 }
  0x9d   : > { %773 = vperm.xlu0 %2035, %v765_v7  }
 0x107   : > { %v759_v6 = vpop.permute.xlu0 %758 }
 0x108   : > { %v2029_v8 = vpack.i.bf16 %v759_v6, %v756_v3 }
 0x10a   : > { %2030 = vrot.lane.b32.xlu1 %v2029_v8, %s2103_s3 }
 0x10b   : > { %v781_v15 = vpop.permute.xlu0 %780 }
 0x10e   : > { %768 = vperm.xlu1 %2034, %v764_v10  }
 0x11c   : > { %v774_v19 = vpop.permute.xlu0 %773 }
 0x17c   : > { %v2031_v11 = vpop.permute.xlu1 %2030 }
 0x17d   : > { %v2033_v12 = vunpack.i.h.bf16 %v2031_v11  ;;  %v2032_v13 = vunpack.i.l.bf16 %v2031_v11 }
 0x17f   : > { %v1970_v14 = vpack.c.bf16 %v2033_v12, %v2032_v13  ;;  %v2106_v13 = vmov 0.0|0.0  }
 0x181   : > { %1971 = vmatprep.subr.bf16.mxu0 %v1970_v14 }
 0x182   : > { %1973 = vmatpush3.bf16.msra.mxu0 %v1970_v14 }
 0x183   : > { %1891 = vmatprep.subr.mxu0 %v781_v15 }
 0x186   : > { %1892 = vmatpush3.msra.mxu0 %v781_v15 }
 0x187   : > { %1894 = vmatmul.mubr.msk.f32.vlgmr.msra.gmra.mrb[0].mxu0 %vm785_vm2, %v763_v16  ;;  %1911 = vmatprep.subr.mxu0 %v2258_v1 }
 0x188   : > { %1912 = vmatpush3.msra.mxu0 %v2258_v1  ;;  %1913 = vmatprep.mubr.msk.f32.mxu0 %vm746_vm0, %v1007_v17 }
 0x189   : > { %1986 = vmatprep.subr.bf16.mxu0 %v2106_v13 }
 0x18b   : > { %1914 = vmatmul.mubr.msk.f32.vlgmr.msra.gmra.mrb[2].mxu0 %vm746_vm0, %v1008_v18 }
 0x18c   : > { %1928 = vmatprep.mubr.msk.f32.mxu0 %vm2109_vm4, %v2099_v0 }
 0x18d   : > { %v769_v20 = vpop.permute.xlu1 %768 }
 0x25a   : > { %v1895_v21 = vpop.f32.mrb[0].mxu0 }
 0x25b   : > { %v864_v22 = vadd.f32 %v1895_v21, %v774_v19  ;;  %v858_v23 = vpop.f32.mrb[1].mxu0 }
 0x25c   : > { %v859_v24 = vadd.f32 %v858_v23, %v769_v20 }
 0x25d   : > { %v868_v25 = vmax.f32 %v864_v22, 0.0  ;;  %v1129_v22 = vld [vmem:[%s2513_s1] sm:$0xff] }
 0x25e   : > { %v867_v26 = vmax.f32 %v859_v24, 0.0  ;;  %v1915_v35 = vpop.f32.mrb[2].mxu0 }
 0x25f   : > { %v1093_v44 = vpop.f32.mrb[3].mxu0 }
 0x260   : > { %v2041_v27 = vpack.i.bf16 %v868_v25, %v867_v26  ;;  %871 = vrot.lane.b32.xlu1 %v867_v26, %s2490_s0 }
 0x264   : > { %873 = vrot.lane.b32.xlu1 %v868_v25, %s2490_s0  ;;  %s2110_s0 = smov 15  }
 0x268   : > { %2042 = vrot.lane.b32.xlu1 %v2041_v27, %s2101_s7  ;;  %s2108_s7 = smov 124  }
 0x2d2   : > { %v872_v28 = vpop.permute.xlu1 %871 }
 0x2d3   : > { %877 = vst.msk [vmem:[#allocation2] sm:$0xff] %vm754_vm1, %v872_v28 }
 0x2d6   : > { %v874_v29 = vpop.permute.xlu1 %873 }
 0x2d7   : > { %878 = vst.msk [vmem:[#allocation2 + $0x8] sm:$0xff] %vm754_vm1, %v874_v29 }
 0x2da   : > { %v879_v30 = vld [vmem:[#allocation2] sm:$0xff]  ;;  %v2043_v33 = vpop.permute.xlu1 %2042 }
 0x2de   : > { %v880_v31 = vld [vmem:[#allocation2 + $0x8] sm:$0xff] }
 0x2df   : > { %v2036_v32 = vpack.i.bf16 %v880_v31, %v879_v30 }
 0x2e1   : > { %2037 = vrot.lane.b32.xlu0 %v2036_v32, %s2493_s30 }
 0x2e5   : > { %2047 = vrot.lane.b32.xlu0 %v2036_v32, %s2103_s3 }
 0x2e9   : > { %2057 = vrot.lane.b32.xlu0 %v2043_v33, %s2103_s3 }
 0x2ed   : > { %902 = vperm.xlu0 %2035, %v894_v34  }
 0x2f1   : > { %1018 = vperm.xlu0 %2035, %v1010_v36  }
 0x353   : > { %v2038_v37 = vpop.permute.xlu0 %2037 }
 0x354   : > { %2052 = vrot.lane.b32.xlu1 %v2038_v37, %s2103_s3  ;;  %s2514_s3 = sld [smem:[#allocation10_spill]] }
 0x357   : > { %v2048_v39 = vpop.permute.xlu0 %2047 }
 0x358   : > { %v2050_v40 = vunpack.i.h.bf16 %v2048_v39  ;;  %v2049_v41 = vunpack.i.l.bf16 %v2048_v39  ;;  %897 = vperm.xlu1 %2034, %v893_v42  }
 0x35a   : > { %v1974_v43 = vpack.c.bf16 %v2050_v40, %v2049_v41  ;;  %v1128_v32 = vld [vmem:[%s2514_s3] sm:$0xff]  ;;  %s1846_s3 = sshll.u32 %s2518_s26, 4 }
 0x35b   : > { %v2058_v46 = vpop.permute.xlu0 %2057  ;;  %v1329_v40 = vld [vmem:[%s2470_s12] sm:$0xff]  ;;  %s745_s2 = scalar_lea.vmem %s2482_s24, %s1846_s3 }
 0x35c   : > { %1975 = vmatprep.subr.bf16.mxu1 %v1974_v43  ;;  %1013 = vperm.xlu1 %2034, %v1009_v45   ;;  %v2060_v48 = vunpack.i.h.bf16 %v2058_v46  ;;  %v2059_v49 = vunpack.i.l.bf16 %v2058_v46 }
 0x35d   : > { %1977 = vmatpush3.bf16.msra.mxu1 %v1974_v43 }
 0x35e   : > { %v1982_v53 = vpack.c.bf16 %v2060_v48, %v2059_v49  ;;  %v1238_v49 = vld [vmem:[%s2467_s9] sm:$0xff] }
 0x36c   : > { %v903_v55 = vpop.permute.xlu0 %902 }
 0x370   : > { %v1019_v57 = vpop.permute.xlu0 %1018 }
 0x371   : > { %v1099_v63 = vadd.f32 %v1915_v35, %v1019_v57 }
 0x3c6   : > { %v2053_v47 = vpop.permute.xlu1 %2052 }
 0x3c7   : > { %v2055_v50 = vunpack.i.h.bf16 %v2053_v47  ;;  %v2054_v51 = vunpack.i.l.bf16 %v2053_v47 }
 0x3c9   : > { %v1978_v52 = vpack.c.bf16 %v2055_v50, %v2054_v51  ;;  %v1328_v51 = vld [vmem:[%s2469_s11] sm:$0xff] }
 0x3cb   : > { %1979 = vmatprep.subr.bf16.mxu1 %v1978_v52 }
 0x3cc   : > { %1981 = vmatpush3.bf16.msra.mxu1 %v1978_v52 }
 0x3cd   : > { %1983 = vmatprep.subr.bf16.mxu1 %v1982_v53 }
 0x3d0   : > { %1985 = vmatpush3.bf16.msra.mxu1 %v1982_v53 }
 0x3d1   : > { %1995 = vmatprep.subr.bf16.mxu1 %v2106_v13 }
 0x3d3   : > { %1909 = vmatmul.mubr.msk.f32.vlgmr.msra.gmra.mrb[0].mxu1 %vm923_vm3, %v892_v54 }
 0x3d4   : > { %1937 = vmatprep.mubr.msk.f32.mxu1 %vm2109_vm4, %v2099_v0 }
 0x3d7   : > { %v898_v56 = vpop.permute.xlu1 %897 }
 0x3db   : > { %v1014_v59 = vpop.permute.xlu1 %1013 }
 0x3dc   : > { %v1094_v3 = vadd.f32 %v1093_v44, %v1014_v59  ;;  %v1239_v44 = vld [vmem:[%s2468_s10] sm:$0xff] }
 0x4a6   : > { %v1910_v58 = vpop.f32.mrb[0].mxu1 }
 0x4a7   : > { %v1002_v60 = vadd.f32 %v1910_v58, %v903_v55  ;;  %v996_v61 = vpop.f32.mrb[1].mxu1 }
 0x4a8   : > { %v997_v62 = vadd.f32 %v996_v61, %v898_v56 }
 0x4a9   : > { %v1006_v2 = vmax.f32 %v1002_v60, 0.0 }
 0x4aa   : > { %v1005_v4 = vmax.f32 %v997_v62, 0.0 }
 0x4ab   : > { %v1103_v5 = vadd.f32 %v1099_v63, %v1006_v2  ;;  %v1422_v63 = vld [vmem:[%s2472_s14] sm:$0xff] }
 0x4ac   : > { %v1102_v6 = vadd.f32 %v1094_v3, %v1005_v4 }
 0x4ad   : > { %v2321_v7 = vmax.f32 %v1103_v5, 0.0 }
 0x4ae   : > { %v2323_v8 = vmax.f32 %v1102_v6, 0.0  ;;  %v1421_v6 = vld [vmem:[%s2471_s13] sm:$0xff] }
 0x4af   : > { %1110 = vrot.lane.b32.xlu0 %v2321_v7, %s2512_s29 }
 0x4b0   : > { %1108 = vrot.lane.b32.xlu1 %v2323_v8, %s2512_s29  ;;  %v2066_v9 = vpack.i.bf16 %v2321_v7, %v2323_v8  ;;  %v1999_v10 = vpack.c.bf16 %v2321_v7, %v2323_v8 }
 0x4b3   : > { %2067 = vrot.lane.b32.xlu0 %v2066_v9, %s2105_s27 }
 0x521   : > { %v1111_v11 = vpop.permute.xlu0 %1110 }
 0x522   : > { %1115 = vst.msk [vmem:[#allocation2 + $0x8] sm:$0xff] %vm754_vm1, %v1111_v11  ;;  %v1109_v12 = vpop.permute.xlu1 %1108 }
 0x523   : > { %1114 = vst.msk [vmem:[#allocation2] sm:$0xff] %vm754_vm1, %v1109_v12  ;;  %v1513_v12 = vld [vmem:[%s2474_s16] sm:$0xff] }
 0x525   : > { %v2068_v17 = vpop.permute.xlu0 %2067 }
 0x529   : > { %v1117_v14 = vld [vmem:[#allocation2 + $0x8] sm:$0xff] }
 0x52a   : > { %v1116_v15 = vld [vmem:[#allocation2] sm:$0xff] }
 0x52b   : > { %v2061_v16 = vpack.i.bf16 %v1117_v14, %v1116_v15 }
 0x52d   : > { %2062 = vrot.lane.b32.xlu1 %v2061_v16, %s2107_s25 }
 0x531   : > { %2072 = vrot.lane.b32.xlu1 %v2061_v16, %s2108_s7  ;;  %v1595_v16 = vld [vmem:[%s2475_s17] sm:$0xff] }
 0x535   : > { %2082 = vrot.lane.b32.xlu1 %v2068_v17, %s2108_s7  ;;  %v1702_v17 = vld [vmem:[%s2479_s21] sm:$0xff] }
 0x59f   : > { %v2063_v18 = vpop.permute.xlu1 %2062 }
 0x5a0   : > { %2077 = vrot.lane.b32.xlu0 %v2063_v18, %s2108_s7  ;;  %v1714_v18 = vld [vmem:[%s2480_s22] sm:$0xff] }
 0x5a3   : > { %v2073_v19 = vpop.permute.xlu1 %2072 }
 0x5a4   : > { %v2075_v20 = vunpack.i.h.bf16 %v2073_v19  ;;  %v2074_v21 = vunpack.i.l.bf16 %v2073_v19  ;;  %1132 = vperm.xlu0 %2035, %v1129_v22   ;;  %v1610_v19 = vld [vmem:[%s2478_s20] sm:$0x1f] }
 0x5a5   : > { %v1512_v22 = vld [vmem:[%s2473_s15] sm:$0xff] }
 0x5a6   : > { %v1987_v23 = vpack.c.bf16 %v2075_v20, %v2074_v21 }
 0x5a7   : > { %v2083_v24 = vpop.permute.xlu1 %2082 }
 0x5a8   : > { %1988 = vmatpush3.bf16.msra.mxu0 %v1987_v23  ;;  %v2085_v28 = vunpack.i.h.bf16 %v2083_v24  ;;  %v2084_v29 = vunpack.i.l.bf16 %v2083_v24 }
 0x5a9   : > { %1989 = vmatprep.subr.bf16.mxu0 %v2106_v13 }
 0x5aa   : > { %v1993_v31 = vpack.c.bf16 %v2085_v28, %v2084_v29 }
 0x612   : > { %v2078_v25 = vpop.permute.xlu0 %2077 }
 0x613   : > { %v2080_v26 = vunpack.i.h.bf16 %v2078_v25  ;;  %v2079_v27 = vunpack.i.l.bf16 %v2078_v25 }
 0x615   : > { %v1990_v30 = vpack.c.bf16 %v2080_v26, %v2079_v27  ;;  %v1703_v27 = vld [vmem:[%s2479_s21 + $0x8] sm:$0xff] }
 0x617   : > { %1991 = vmatpush3.bf16.msra.mxu0 %v1990_v30 }
 0x618   : > { %1992 = vmatprep.subr.bf16.mxu0 %v2106_v13 }
 0x61b   : > { %1994 = vmatpush3.bf16.msra.mxu0 %v1993_v31 }
 0x61c   : > { %2001 = vmatprep.subr.bf16.mxu0 %v2106_v13 }
 0x61e   : > { %1929 = vmatmul.mubr.msk.f32.vlgmr.msra.gmra.mrb[4].mxu0 %vm923_vm3, %v1128_v32 }
 0x61f   : > { %1953 = vmatprep.mubr.msk.f32.mxu0 %vm2109_vm4, %v2099_v0 }
 0x623   : > { %v1133_v33 = vpop.permute.xlu0 %1132 }
 0x6f1   : > { %v1222_v34 = vpop.f32.mrb[4].mxu0 }
 0x6f2   : > { %v1223_v35 = vadd.f32 %v1222_v34, %v1133_v33  ;;  %v1930_v36 = vpop.f32.mrb[5].mxu0 }
 0x6f4   : > { %v1226_v37 = vmax.f32 %v1223_v35, 0.0 }
 0x6f6   : > { %1228 = vrot.lane.b32.xlu1 %v1226_v37, %s2512_s29 }
 0x6fa   : > { %1236 = vrot.lane.b32.xlu1 %v1226_v37, %s2105_s27  ;;  %s2112_s27 = smov 113  }
 0x768   : > { %v1229_v38 = vpop.permute.xlu1 %1228 }
 0x769   : > { %1231 = vst.msk [vmem:[#allocation2] sm:$0xff] %vm754_vm1, %v1229_v38 }
 0x76c   : > { %v1237_v39 = vpop.permute.xlu1 %1236 }
 0x76d   : > { %1249 = vrot.lane.b32.xlu1 %v1237_v39, %s2108_s7 }
 0x770   : > { %v1232_v41 = vld [vmem:[#allocation2] sm:$0xff] }
 0x771   : > { %1234 = vrot.lane.b32.xlu0 %v1232_v41, %s2107_s25  ;;  %1332 = vperm.xlu1 %2034, %v1329_v40  }
 0x7df   : > { %v1250_v50 = vpop.permute.xlu1 %1249 }
 0x7e3   : > { %v1235_v42 = vpop.permute.xlu0 %1234 }
 0x7e4   : > { %v2086_v43 = vpack.i.bf16 %v1235_v42, %v1232_v41 }
 0x7e6   : > { %2087 = vrot.lane.b32.xlu0 %v2086_v43, %s2108_s7 }
 0x7ea   : > { %1242 = vperm.xlu0 %2035, %v1239_v44  }
 0x7f0   : > { %v1333_v56 = vpop.permute.xlu1 %1332 }
 0x858   : > { %v2088_v45 = vpop.permute.xlu0 %2087 }
 0x859   : > { %v2090_v46 = vunpack.i.h.bf16 %v2088_v45  ;;  %v2089_v47 = vunpack.i.l.bf16 %v2088_v45 }
 0x85b   : > { %v1996_v48 = vpack.c.bf16 %v2090_v46, %v2089_v47  ;;  %v1609_v46 = vld [vmem:[%s2477_s19] sm:$0x1f] }
 0x85d   : > { %1997 = vmatpush3.bf16.msra.mxu1 %v1996_v48 }
 0x85e   : > { %1935 = vmatprep.subr.mxu1 %v2099_v0 }
 0x861   : > { %1936 = vmatpush3.msra.mxu1 %v1250_v50 }
 0x862   : > { %1938 = vmatmul.mubr.msk.f32.vlgmr.msra.gmra.mrb[2].mxu1 %vm785_vm2, %v1238_v49  ;;  %1998 = vmatprep.subr.bf16.mxu1 %v2106_v13 }
 0x863   : > { %2000 = vmatpush3.bf16.msra.mxu1 %v1999_v10  ;;  %1944 = vmatprep.mubr.msk.f32.mxu1 %vm2109_vm4, %v2099_v0 }
 0x864   : > { %2004 = vmatprep.subr.bf16.mxu1 %v2106_v13  ;;  %v1602_v13 = vld [vmem:[%s2476_s18] sm:$0xff] }
 0x866   : > { %1945 = vmatmul.mubr.msk.f32.vlgmr.msra.gmra.mrb[4].mxu1 %vm1335_vm5, %v1328_v51 }
 0x867   : > { %1962 = vmatprep.mubr.msk.f32.mxu1 %vm2109_vm4, %v2099_v0 }
 0x869   : > { %v1243_v52 = vpop.permute.xlu0 %1242 }
 0x935   : > { %v1323_v53 = vpop.f32.mrb[2].mxu1 }
 0x936   : > { %v1324_v54 = vadd.f32 %v1323_v53, %v1243_v52  ;;  %v1939_v55 = vpop.f32.mrb[3].mxu1 }
 0x938   : > { %v1327_v58 = vmax.f32 %v1324_v54, 0.0 }
 0x939   : > { %v1405_v57 = vpop.f32.mrb[4].mxu1 }
 0x93a   : > { %v1406_v59 = vadd.f32 %v1405_v57, %v1333_v56  ;;  %v1946_v60 = vpop.f32.mrb[5].mxu1 }
 0x93c   : > { %v1409_v61 = vadd.f32 %v1406_v59, %v1327_v58 }
 0x93e   : > { %v2387_v62 = vmax.f32 %v1409_v61, 0.0 }
 0x940   : > { %1412 = vrot.lane.b32.xlu0 %v2387_v62, %s2512_s29 }
 0x944   : > { %1425 = vperm.xlu0 %2035, %v1422_v63  }
 0x9b2   : > { %v1413_v2 = vpop.permute.xlu0 %1412 }
 0x9b3   : > { %1415 = vst.msk [vmem:[#allocation2] sm:$0xff] %vm754_vm1, %v1413_v2 }
 0x9ba   : > { %v1416_v3 = vld [vmem:[#allocation2] sm:$0xff] }
 0x9bb   : > { %1418 = vrot.lane.b32.xlu1 %v1416_v3, %s2108_s7 }
 0x9c3   : > { %v1426_v7 = vpop.permute.xlu0 %1425 }
 0xa2d   : > { %v1419_v4 = vpop.permute.xlu1 %1418 }
 0xa2e   : > { %v2002_v5 = vpack.c.bf16 %v1419_v4, %v1416_v3 }
 0xa30   : > { %2003 = vmatpush3.bf16.msra.mxu0 %v2002_v5 }
 0xa31   : > { %1951 = vmatprep.subr.mxu0 %v2099_v0 }
 0xa34   : > { %1952 = vmatpush3.msra.mxu0 %v2387_v62 }
 0xa35   : > { %1954 = vmatmul.mubr.msk.f32.vlgmr.msra.gmra.mrb[6].mxu0 %vm785_vm2, %v1421_v6  ;;  %1965 = vmatprep.subr.mxu0 %v2099_v0 }
 0xa36   : > { %1967 = vmatprep.mubr.msk.f32.mxu0 %vm2109_vm4, %v2099_v0 }
 0xb08   : > { %v1497_v8 = vpop.f32.mrb[6].mxu0 }
 0xb09   : > { %v1498_v9 = vadd.f32 %v1497_v8, %v1426_v7  ;;  %v1955_v10 = vpop.f32.mrb[7].mxu0 }
 0xb0b   : > { %v1501_v11 = vmax.f32 %v1498_v9, 0.0 }
 0xb0d   : > { %1503 = vrot.lane.b32.xlu1 %v1501_v11, %s2512_s29  ;;  %s2515_s29 = smov 127  }
 0xb11   : > { %1516 = vperm.xlu1 %2034, %v1513_v12  }
 0xb15   : > { %1605 = vperm.xlu1 %2034, %v1602_v13  }
 0xb7f   : > { %v1504_v14 = vpop.permute.xlu1 %1503 }
 0xb80   : > { %1506 = vst.msk [vmem:[#allocation2] sm:$0xff] %vm754_vm1, %v1504_v14 }
 0xb87   : > { %v1507_v15 = vld [vmem:[#allocation2] sm:$0xff] }
 0xb88   : > { %1509 = vrot.lane.b32.xlu0 %v1507_v15, %s2108_s7 }
 0xb8c   : > { %1598 = vperm.xlu0 %2035, %v1595_v16  }
 0xb90   : > { %1693 = vrot.lane.b32.xlu0 %v2258_v1, %s2515_s29  ;;  %v1517_v32 = vpop.permute.xlu1 %1516  ;;  %s2516_s29 = sshll.u32 %s2518_s26, 3 }
 0xb94   : > { %1706 = vrot.lane.b32.xlu0 %v1702_v17, %s2110_s0  ;;  %v1606_v33 = vpop.permute.xlu1 %1605 }
 0xb98   : > { %1718 = vrot.lane.b32.xlu0 %v1714_v18, %s2110_s0 }
 0xb9c   : > { %1613 = vperm.xlu0 %2035, %v1610_v19  }
 0xbfa   : > { %v1510_v20 = vpop.permute.xlu0 %1509 }
 0xbfb   : > { %v2005_v21 = vpack.c.bf16 %v1510_v20, %v1507_v15 }
 0xbfd   : > { %2006 = vmatpush3.bf16.msra.mxu1 %v2005_v21 }
 0xbfe   : > { %1960 = vmatprep.subr.mxu1 %v2099_v0  ;;  %v1715_v0 = vld [vmem:[%s2480_s22 + $0x8] sm:$0xff] }
 0xc01   : > { %1961 = vmatpush3.msra.mxu1 %v1501_v11 }
 0xc02   : > { %1963 = vmatmul.mubr.msk.f32.vlgmr.msra.gmra.mrb[6].mxu1 %vm785_vm2, %v1512_v22 }
 0xc0b   : > { %v1599_v23 = vpop.permute.xlu0 %1598 }
 0xc0f   : > { %v1694_v24 = vpop.permute.xlu0 %1693 }
 0xc10   : > { %v1696_v25 = vsub.f32 %v2258_v1, %v1694_v24 }
 0xc12   : > { %v1697_v26 = vmul.f32 0.70710677, %v1696_v25 }
 0xc13   : > { %v1707_v28 = vpop.permute.xlu0 %1706 }
 0xc14   : > { %1699 = vrot.lane.b32.xlu1 %v1697_v26, %s2111_s4  ;;  %v1712_v29 = vmul.f32 %v1707_v28, %v2258_v1 }
 0xc17   : > { %v1719_v30 = vpop.permute.xlu0 %1718 }
 0xc18   : > { %1708 = vrot.lane.b32.xlu1 %v1703_v27, %s2110_s0  ;;  %v1724_v31 = vadd.f32 %v1719_v30, %v1712_v29 }
 0xc1b   : > { %v1614_v47 = vpop.permute.xlu0 %1613 }
 0xc1c   : > { %1720 = vrot.lane.b32.xlu1 %v1715_v0, %s2110_s0 }
 0xc20   : > { %1728 = vrot.lane.b32.xlu1 %v1724_v31, %s2112_s27 }
 0xc86   : > { %v1700_v34 = vpop.permute.xlu1 %1699 }
 0xc8a   : > { %v1709_v35 = vpop.permute.xlu1 %1708 }
 0xc8b   : > { %v1713_v36 = vmul.f32 %v1709_v35, %v1700_v34 }
 0xc8e   : > { %v1721_v37 = vpop.permute.xlu1 %1720 }
 0xc8f   : > { %v1725_v38 = vadd.f32 %v1721_v37, %v1713_v36 }
 0xc91   : > { %1730 = vrot.lane.b32.xlu0 %v1725_v38, %s2112_s27  ;;  %s740_s27 = scalar_lea.vmem %s2481_s23, %s2516_s29 }
 0xc92   : > { %v1729_v49 = vpop.permute.xlu1 %1728 }
 0xc93   : > { %1735 = vst.msk [vmem:[%s745_s2] sm:$0xff] %vm1734_vm6, %v1729_v49 }
 0xcd5   : > { %v1588_v39 = vpop.f32.mrb[6].mxu1 }
 0xcd6   : > { %v1589_v40 = vadd.f32 %v1588_v39, %v1517_v32  ;;  %v1964_v41 = vpop.f32.mrb[7].mxu1 }
 0xcd8   : > { %v1592_v42 = vmax.f32 %v1589_v40, 0.0 }
 0xcda   : > { %v1593_v1 = vadd.f32 %v1592_v42, %v2387_v62 }
 0xcdc   : > { %v1594_v43 = vmax.f32 %v1593_v1, 0.0 }
 0xcde   : > { %v1601_v44 = vmul.f32 %v1599_v23, %v1594_v43 }
 0xce0   : > { %v1608_v45 = vadd.f32 %v1606_v33, %v1601_v44 }
 0xce2   : > { %1966 = vmatpush3.msra.mxu0 %v1608_v45 }
 0xce3   : > { %1968 = vmatmul.mubr.msk.f32.vlgmr.msra.gmra.mrb[8].mxu0 %vm746_vm0, %v1609_v46 }
 0xd03   : > { %v1731_v48 = vpop.permute.xlu0 %1730 }
 0xd04   : > { %1736 = vst.msk [vmem:[%s745_s2 + $0x8] sm:$0xff] %vm1734_vm6, %v1731_v48 }
 0xdb6   : > { %v1685_v50 = vpop.f32.mrb[8].mxu0 }
 0xdb7   : > { %v1686_v51 = vadd.f32 %v1685_v50, %v1614_v47  ;;  %v1969_v52 = vpop.f32.mrb[9].mxu0 }
 0xdb9   : > { %1690 = vst.msk [vmem:[%s740_s27] sm:$0x1f] %vm1689_vm7, %v1686_v51 }
 0xdba PF: > { %s35_s5 = sadd.s32 1, %s2097_s5  }
 0xdbb   : > { %p32_p4 = scmp.ge.s32.totalorder %s35_s5, 4  }
 0xdbd   :  { %34 = sbr.rel (!%p32_p4) target bundleno = 10 (0xa), region = 154 }

</bundles_post_ra>
